<compile_context>
chip_gen: v6e
topology: v6e:2x2x1
jax: 0.10.0
libtpu: 0.0.40
codegen_flags: <defaults>
</compile_context>

<pallas_src>
import functools

import jax
import jax.numpy as jnp
from jax import lax
from jax.experimental import pallas as pl
from jax.experimental.pallas import tpu as pltpu

TARGET_SR = 48000
EMBED_DIM = 128            # synthetic CLAP embedding dim (real CLAP uses 512)
DEFAULT_TIME_TILE = 32768  # multiple of 128; amortizes ~0.35us per-step cost


def _round_up(x, m):
    return ((x + m - 1) // m) * m


# ---------------------------------------------------------------------------
# Kernel 1: streaming audio->embedding matmul, accumulated over the time axis.
# ---------------------------------------------------------------------------
def _stream_embed_kernel(audio_ref, w_ref, part_ref):
    """audio_ref: (rows, Tk) f32, w_ref: (Tk, D) bf16, part_ref: (rows, D) f32."""

    @pl.when(pl.program_id(1) == 0)
    def _():
        part_ref[...] = jnp.zeros_like(part_ref)

    # bf16 x bf16 products, f32 accumulation on the MXU.  The kernel is
    # HBM-bound (~3 flops/byte) so an f32-LHS variant for exact float parity
    # with a PyTorch reference would be nearly free; bf16 keeps the MXU at
    # its fast rate.  (Cast kept adjacent to the dot; no redundant f32 cast.)
    part_ref[...] += jnp.dot(
        audio_ref[...].astype(jnp.bfloat16), w_ref[...],
        preferred_element_type=jnp.float32)


# ---------------------------------------------------------------------------
# Kernel 2: tiny finalize -- sum partials + channels, L2-normalize, distances.
# ---------------------------------------------------------------------------
def _finalize_kernel(part_ref, cos_ref, mse_ref, l1_ref, *, batch):
    """part_ref: (P, 2B, C, D) f32 -> three (1, 1) f32 losses."""
    acc = jnp.sum(part_ref[...], axis=0)            # (2B, C, D) sum partials
    # Channel "mono mix": sum over C.  The 1/C factor of audio.mean(dim=1)
    # cancels under the L2 normalization below (valid because the synthetic
    # encoder is linear and every distance uses the normalized embeddings).
    acc = jnp.sum(acc, axis=1)                      # (2B, D)

    # CLAP returns L2-normalized embeddings (F.normalize, eps ~ 1e-12).
    inv_norm = lax.rsqrt(
        jnp.maximum(jnp.sum(acc * acc, axis=-1, keepdims=True),
                    jnp.float32(1e-24)))
    emb = acc * inv_norm
    x = emb[:batch]                                  # input embeddings  (B, D)
    y = emb[batch:]                                  # target embeddings (B, D)

    # cosine: embeddings are unit-norm, so cosine similarity == dot product
    # (F.cosine_similarity's eps clamp is a no-op for nonzero embeddings).
    cos = jnp.sum(x * y, axis=-1, keepdims=True)     # (B, 1)
    cos_ref[...] = 1.0 - jnp.mean(cos, keepdims=True)
    d = x - y
    mse_ref[...] = jnp.mean(d * d, keepdims=True)
    l1_ref[...] = jnp.mean(jnp.abs(d), keepdims=True)


@functools.partial(jax.jit, static_argnames=("batch", "channels", "tile"))
def _clap_losses(audio2d, weight, *, batch, channels, tile):
    """audio2d: (2B*C, T_pad) f32, weight: (T_pad, D) bf16 -> 3 scalar losses."""
    rows, t = audio2d.shape
    t_w, d = weight.shape
    assert t_w == t and t % tile == 0 and tile % 128 == 0
    num_tiles = t // tile
    # Split the serial time reduction into P partials on a leading 'parallel'
    # grid axis so both v7x TensorCores stream HBM concurrently (harmless on
    # single-core v5e / v6e).
    num_partials = 2 if (num_tiles >= 2 and num_tiles % 2 == 0) else 1
    kt = num_tiles // num_partials

    partials = pl.pallas_call(
        _stream_embed_kernel,
        out_shape=jax.ShapeDtypeStruct((num_partials, rows, d), jnp.float32),
        grid=(num_partials, kt),                      # reduction axis last
        in_specs=[
            pl.BlockSpec((rows, tile), lambda p, k: (0, p * kt + k)),
            pl.BlockSpec((tile, d), lambda p, k: (p * kt + k, 0)),
        ],
        out_specs=pl.BlockSpec((None, rows, d), lambda p, k: (p, 0, 0)),
        compiler_params=pltpu.CompilerParams(
            dimension_semantics=("parallel", "arbitrary"),
            # Per-step VMEM at tile=32768, D=128, rows=16:
            #   bf16 weight tile 8 MiB + f32 audio tile 2 MiB, double-buffered
            #   ~= 20 MiB, plus a tiny resident (rows, D) accumulator block.
            # 32 MiB is above v5e's 16 MiB scoped default and inside v7x's
            # 64 MiB physical VMEM.  If D grows to 512 (real CLAP), cap the
            # time tile at 8192-16384 on v7x so the double-buffered weight
            # stays under its 64 MiB VMEM.
            vmem_limit_bytes=32 * 1024 * 1024,
        ),
    )(audio2d, weight)

    # Free metadata reshape between the two pallas_calls (contiguous view):
    # rows are laid out [b0c0, b0c1, ..., b0c(C-1), b1c0, ...].
    partials4 = partials.reshape(num_partials, 2 * batch, channels, d)

    cos, mse, l1 = pl.pallas_call(
        functools.partial(_finalize_kernel, batch=batch),
        out_shape=(jax.ShapeDtypeStruct((1, 1), jnp.float32),) * 3,
        in_specs=[pl.BlockSpec(memory_space=pltpu.MemorySpace.VMEM)],
        out_specs=(pl.BlockSpec(memory_space=pltpu.MemorySpace.VMEM),) * 3,
    )(partials4)
    return cos[0, 0], mse[0, 0], l1[0, 0]


# ---------------------------------------------------------------------------
# Module wrapper (mirrors CLAPFeatureLoss.forward semantics)
# ---------------------------------------------------------------------------
class CLAPFeatureLossPallas:
    """Pallas TPU port of CLAPFeatureLoss (audio targets only)."""

    def __init__(self, seq_len, key, time_tile=DEFAULT_TIME_TILE):
        self.target_sample_rate = TARGET_SR
        self.seq_len = seq_len
        # Time tile: multiple of 128, at most `time_tile`, chosen to minimize
        # zero padding along T.
        num_tiles = max(1, -(-seq_len // time_tile))
        self.tile = _round_up(-(-seq_len // num_tiles), 128)
        self.t_pad = self.tile * num_tiles

        # Deterministic synthetic "CLAP audio encoder": a linear time->embed
        # projection stored in bf16 (the weight stream dominates HBM traffic;
        # padded once here so no per-call weight copy is needed).
        # TODO(synk): the pretrained LAION-CLAP HTSAT tower / checkpoint load
        # has no Pallas equivalent; replaced by this synthetic projection.
        # TODO(synk): optional weight quantization (int8 on v5e/v6e, fp8 on
        # v7x) would halve the weight stream; omitted since it alters numerics.
        w = (jax.random.normal(key, (seq_len, EMBED_DIM), jnp.float32)
             / jnp.sqrt(jnp.float32(seq_len))).astype(jnp.bfloat16)
        if self.t_pad != seq_len:
            # Zero-padded rows contribute nothing to the accumulator.
            w = jnp.pad(w, ((0, self.t_pad - seq_len), (0, 0)))
        self.audio_proj = w

    def _prep_audio(self, audio, sample_rate):
        if audio.ndim == 2:                       # (B, T) -> (B, 1, T)
            audio = audio[:, None, :]
        if sample_rate != self.target_sample_rate:
            # TODO(synk): torchaudio sinc-interpolation resampling has no
            # clean Pallas equivalent; audio must already be at 48 kHz.
            raise NotImplementedError("resampling not implemented")
        return audio

    def __call__(self, input_audio, target, sample_rate, distance_fn="cosine"):
        if isinstance(target, str) or (
            isinstance(target, (list, tuple)) and len(target) > 0
            and isinstance(target[0], str)
        ):
            # TODO(synk): text tower (RoBERTa tokenizer + encoder) has no
            # Pallas equivalent; only audio targets are supported here.
            raise NotImplementedError("text targets not supported")

        wanted = distance_fn if isinstance(distance_fn, (list, tuple)) \
            else (distance_fn,)
        for name in wanted:
            if name not in ("cosine", "mse", "l1"):
                raise ValueError(f"Unsupported distance function: {name}")

        a = self._prep_audio(input_audio, sample_rate)
        b = self._prep_audio(target, sample_rate)
        assert a.shape == b.shape, "input and target audio must match in shape"
        bsz, ch, t = a.shape
        assert t == self.seq_len, "audio length must match encoder seq_len"

        # Stack input+target and fold channels into matmul rows: the (T, D)
        # weight is streamed from HBM exactly once for both embeddings, the
        # LHS tile is a sublane-dense (2B*C, Tk) block (no C<8 padding), and
        # no per-step cross-sublane (XLU) reduction is needed.
        audio2d = jnp.concatenate([a, b], axis=0).reshape(2 * bsz * ch, t)
        if self.t_pad != t:
            audio2d = jnp.pad(audio2d, ((0, 0), (0, self.t_pad - t)))

        # One streaming pass produces all three distances; pass a tuple of
        # metric names to get them all without re-streaming the weight.
        cos, mse, l1 = _clap_losses(audio2d, self.audio_proj,
                                    batch=bsz, channels=ch, tile=self.tile)
        losses = {"cosine": cos, "mse": mse, "l1": l1}
        if isinstance(distance_fn, (list, tuple)):
            return {name: losses[name] for name in distance_fn}
        return losses[distance_fn]


# ---------------------------------------------------------------------------
if __name__ == "__main__":
    key = jax.random.PRNGKey(0)
    k_in, k_tgt, k_w = jax.random.split(key, 3)

    B, C, T = 2, 4, 256                 # small batch / channels / samples
    input_audio = jax.random.normal(k_in, (B, C, T), jnp.float32)
    target_audio = jax.random.normal(k_tgt, (B, C, T), jnp.float32)

    loss_mod = CLAPFeatureLossPallas(seq_len=T, key=k_w)

    # All three metrics from a single streaming pass over the weight.
    losses = loss_mod(input_audio, target_audio, TARGET_SR,
                      distance_fn=("cosine", "mse", "l1"))
    # Single-metric call path (matches the original forward signature).
    loss_cos = loss_mod(input_audio, target_audio, TARGET_SR, "cosine")

    jax.block_until_ready((losses, loss_cos))
    print("KERNEL_OK")
</pallas_src>

<mosaic_0001>
module attributes {stable_mosaic.version = 11 : i64} {
  func.func @_finalize_kernel(%arg0: memref<1x4x4x128xf32, #tpu.memory_space<vmem>>, %arg1: memref<1x1xf32, #tpu.memory_space<vmem>>, %arg2: memref<1x1xf32, #tpu.memory_space<vmem>>, %arg3: memref<1x1xf32, #tpu.memory_space<vmem>>) attributes {dimension_semantics = [], scalar_prefetch = 0 : i64, scratch_operands = 0 : i64, tpu.core_type = #tpu.core_type<tc>} {
    %c0 = arith.constant 0 : index
    %c0_0 = arith.constant 0 : index
    %c0_1 = arith.constant 0 : index
    %c0_2 = arith.constant 0 : index
    %0 = vector.load %arg0[%c0, %c0_0, %c0_1, %c0_2] : memref<1x4x4x128xf32, #tpu.memory_space<vmem>>, vector<1x4x4x128xf32>
    %cst = arith.constant dense<0.000000e+00> : vector<4x4x128xf32>
    %1 = vector.multi_reduction <add>, %0, %cst [0] : vector<1x4x4x128xf32> to vector<4x4x128xf32>
    %cst_3 = arith.constant dense<0.000000e+00> : vector<4x128xf32>
    %2 = vector.multi_reduction <add>, %1, %cst_3 [1] : vector<4x4x128xf32> to vector<4x128xf32>
    %3 = arith.mulf %2, %2 : vector<4x128xf32>
    %cst_4 = arith.constant dense<0.000000e+00> : vector<4xf32>
    %4 = vector.multi_reduction <add>, %3, %cst_4 [1] : vector<4x128xf32> to vector<4xf32>
    %5 = vector.shape_cast %4 : vector<4xf32> to vector<4x1xf32>
    %cst_5 = arith.constant 1.000000e-24 : f32
    %6 = vector.broadcast %cst_5 : f32 to vector<4x1xf32>
    %7 = arith.maximumf %5, %6 : vector<4x1xf32>
    %8 = math.rsqrt %7 : vector<4x1xf32>
    %9 = vector.broadcast %8 : vector<4x1xf32> to vector<4x128xf32>
    %10 = arith.mulf %2, %9 : vector<4x128xf32>
    %11 = vector.extract_strided_slice %10 {offsets = [0, 0], sizes = [2, 128], strides = [1, 1]} : vector<4x128xf32> to vector<2x128xf32>
    %12 = vector.extract_strided_slice %10 {offsets = [2, 0], sizes = [2, 128], strides = [1, 1]} : vector<4x128xf32> to vector<2x128xf32>
    %13 = arith.mulf %11, %12 : vector<2x128xf32>
    %cst_6 = arith.constant dense<0.000000e+00> : vector<2xf32>
    %14 = vector.multi_reduction <add>, %13, %cst_6 [1] : vector<2x128xf32> to vector<2xf32>
    %15 = vector.shape_cast %14 : vector<2xf32> to vector<2x1xf32>
    %16 = vector.shape_cast %15 : vector<2x1xf32> to vector<1x2x1xf32>
    %cst_7 = arith.constant dense<0.000000e+00> : vector<1xf32>
    %17 = vector.multi_reduction <add>, %16, %cst_7 [1, 2] : vector<1x2x1xf32> to vector<1xf32>
    %18 = vector.shape_cast %17 : vector<1xf32> to vector<1x1x1xf32>
    %19 = vector.extract %18[0, 0, 0] : f32 from vector<1x1x1xf32>
    %20 = vector.broadcast %19 : f32 to vector<1x1xf32>
    %cst_8 = arith.constant 2.000000e+00 : f32
    %21 = vector.broadcast %cst_8 : f32 to vector<1x1xf32>
    %22 = arith.divf %20, %21 : vector<1x1xf32>
    %cst_9 = arith.constant 1.000000e+00 : f32
    %23 = vector.broadcast %cst_9 : f32 to vector<1x1xf32>
    %24 = arith.subf %23, %22 : vector<1x1xf32>
    %c0_10 = arith.constant 0 : index
    %c0_11 = arith.constant 0 : index
    %25 = vector.load %arg1[%c0_10, %c0_11] : memref<1x1xf32, #tpu.memory_space<vmem>>, vector<1x1xf32>
    tpu.vector_store %arg1[%c0_10, %c0_11], %24 {strides = array<i32>} : memref<1x1xf32, #tpu.memory_space<vmem>>, vector<1x1xf32>,
    %26 = arith.subf %11, %12 : vector<2x128xf32>
    %27 = arith.mulf %26, %26 : vector<2x128xf32>
    %28 = vector.shape_cast %27 : vector<2x128xf32> to vector<1x2x128xf32>
    %cst_12 = arith.constant dense<0.000000e+00> : vector<1xf32>
    %29 = vector.multi_reduction <add>, %28, %cst_12 [1, 2] : vector<1x2x128xf32> to vector<1xf32>
    %30 = vector.shape_cast %29 : vector<1xf32> to vector<1x1x1xf32>
    %31 = vector.extract %30[0, 0, 0] : f32 from vector<1x1x1xf32>
    %32 = vector.broadcast %31 : f32 to vector<1x1xf32>
    %cst_13 = arith.constant 2.560000e+02 : f32
    %33 = vector.broadcast %cst_13 : f32 to vector<1x1xf32>
    %34 = arith.divf %32, %33 : vector<1x1xf32>
    %c0_14 = arith.constant 0 : index
    %c0_15 = arith.constant 0 : index
    %35 = vector.load %arg2[%c0_14, %c0_15] : memref<1x1xf32, #tpu.memory_space<vmem>>, vector<1x1xf32>
    tpu.vector_store %arg2[%c0_14, %c0_15], %34 {strides = array<i32>} : memref<1x1xf32, #tpu.memory_space<vmem>>, vector<1x1xf32>,
    %36 = math.absf %26 : vector<2x128xf32>
    %37 = vector.shape_cast %36 : vector<2x128xf32> to vector<1x2x128xf32>
    %cst_16 = arith.constant dense<0.000000e+00> : vector<1xf32>
    %38 = vector.multi_reduction <add>, %37, %cst_16 [1, 2] : vector<1x2x128xf32> to vector<1xf32>
    %39 = vector.shape_cast %38 : vector<1xf32> to vector<1x1x1xf32>
    %40 = vector.extract %39[0, 0, 0] : f32 from vector<1x1x1xf32>
    %41 = vector.broadcast %40 : f32 to vector<1x1xf32>
    %cst_17 = arith.constant 2.560000e+02 : f32
    %42 = vector.broadcast %cst_17 : f32 to vector<1x1xf32>
    %43 = arith.divf %41, %42 : vector<1x1xf32>
    %c0_18 = arith.constant 0 : index
    %c0_19 = arith.constant 0 : index
    %44 = vector.load %arg3[%c0_18, %c0_19] : memref<1x1xf32, #tpu.memory_space<vmem>>, vector<1x1xf32>
    tpu.vector_store %arg3[%c0_18, %c0_19], %43 {strides = array<i32>} : memref<1x1xf32, #tpu.memory_space<vmem>>, vector<1x1xf32>,
    return
  }
}

module attributes {stable_mosaic.version = 11 : i64} {
  func.func @_stream_embed_kernel(%arg0: i32, %arg1: i32, %arg2: memref<16x256xf32, #tpu.memory_space<vmem>>, %arg3: memref<256x128xbf16, #tpu.memory_space<vmem>>, %arg4: memref<1x16x128xf32, #tpu.memory_space<vmem>>) attributes {dimension_semantics = [#tpu.dimension_semantics<parallel>, #tpu.dimension_semantics<arbitrary>], iteration_bounds = array<i64: 1, 1>, scalar_prefetch = 0 : i64, scratch_operands = 0 : i64, tpu.core_type = #tpu.core_type<tc>, window_params = [{transform_indices = @transform_0, window_bounds = array<i64: 16, 256>}, {transform_indices = @transform_1, window_bounds = array<i64: 256, 128>}, {transform_indices = @transform_2, window_bounds = array<i64: 1, 16, 128>}]} {
    %c0_i32 = arith.constant 0 : i32
    %0 = arith.cmpi eq, %arg1, %c0_i32 : i32
    %1 = arith.extui %0 : i1 to i32
    %c0_i32_0 = arith.constant 0 : i32
    %2 = arith.cmpi ne, %1, %c0_i32_0 : i32
    scf.if %2 {
      %cst_10 = arith.constant 0.000000e+00 : f32
      %13 = vector.broadcast %cst_10 : f32 to vector<16x128xf32>
      %c0_11 = arith.constant 0 : index
      %c0_12 = arith.constant 0 : index
      %c0_13 = arith.constant 0 : index
      %14 = vector.load %arg4[%c0_11, %c0_12, %c0_13] : memref<1x16x128xf32, #tpu.memory_space<vmem>>, vector<1x16x128xf32>
      %15 = vector.shape_cast %14 : vector<1x16x128xf32> to vector<16x128xf32>
      %16 = vector.shape_cast %13 : vector<16x128xf32> to vector<1x16x128xf32>
      tpu.vector_store %arg4[%c0_11, %c0_12, %c0_13], %16 {strides = array<i32>} : memref<1x16x128xf32, #tpu.memory_space<vmem>>, vector<1x16x128xf32>,
    } else {
    }
    %c0 = arith.constant 0 : index
    %c0_1 = arith.constant 0 : index
    %c0_2 = arith.constant 0 : index
    %3 = vector.load %arg4[%c0, %c0_1, %c0_2] : memref<1x16x128xf32, #tpu.memory_space<vmem>>, vector<1x16x128xf32>
    %4 = vector.shape_cast %3 : vector<1x16x128xf32> to vector<16x128xf32>
    %c0_3 = arith.constant 0 : index
    %c0_4 = arith.constant 0 : index
    %5 = vector.load %arg2[%c0_3, %c0_4] : memref<16x256xf32, #tpu.memory_space<vmem>>, vector<16x256xf32>
    %6 = arith.truncf %5 : vector<16x256xf32> to vector<16x256xbf16>
    %c0_5 = arith.constant 0 : index
    %c0_6 = arith.constant 0 : index
    %7 = vector.load %arg3[%c0_5, %c0_6] : memref<256x128xbf16, #tpu.memory_space<vmem>>, vector<256x128xbf16>
    %cst = arith.constant dense<0.000000e+00> : vector<16x128xf32>
    %8 = tpu.matmul %6, %7, %cst {dimension_numbers = #tpu.dot_dimension_numbers<[1], [0], [0], [1], [0, 0, 1, 1], [], []>} : vector<16x256xbf16>, vector<256x128xbf16>, vector<16x128xf32> -> vector<16x128xf32>
    %9 = arith.addf %4, %8 : vector<16x128xf32>
    %c0_7 = arith.constant 0 : index
    %c0_8 = arith.constant 0 : index
    %c0_9 = arith.constant 0 : index
    %10 = vector.load %arg4[%c0_7, %c0_8, %c0_9] : memref<1x16x128xf32, #tpu.memory_space<vmem>>, vector<1x16x128xf32>
    %11 = vector.shape_cast %10 : vector<1x16x128xf32> to vector<16x128xf32>
    %12 = vector.shape_cast %9 : vector<16x128xf32> to vector<1x16x128xf32>
    tpu.vector_store %arg4[%c0_7, %c0_8, %c0_9], %12 {strides = array<i32>} : memref<1x16x128xf32, #tpu.memory_space<vmem>>, vector<1x16x128xf32>,
    return
  }
  func.func @transform_0(%arg0: i32, %arg1: i32) -> (i32, i32) {
    %c1_i32 = arith.constant 1 : i32
    %0 = arith.muli %arg0, %c1_i32 : i32
    %1 = arith.addi %0, %arg1 : i32
    %c0_i32 = arith.constant 0 : i32
    %c0_i32_0 = arith.constant 0 : i32
    return %c0_i32, %1 : i32, i32
  }
  func.func @transform_1(%arg0: i32, %arg1: i32) -> (i32, i32) {
    %c1_i32 = arith.constant 1 : i32
    %0 = arith.muli %arg0, %c1_i32 : i32
    %1 = arith.addi %0, %arg1 : i32
    %c0_i32 = arith.constant 0 : i32
    %c0_i32_0 = arith.constant 0 : i32
    return %1, %c0_i32 : i32, i32
  }
  func.func @transform_2(%arg0: i32, %arg1: i32) -> (i32, i32, i32) {
    %c0_i32 = arith.constant 0 : i32
    %c0_i32_0 = arith.constant 0 : i32
    %c0_i32_1 = arith.constant 0 : i32
    return %arg0, %c0_i32, %c0_i32_0 : i32, i32, i32
  }
}

</mosaic_0001>

<bundles_post_ra>
// kernel: _clap_losses.2
= control target key start
LH: loop header
LB: loop body
LE: loop exit
PB: predicated region body
PF: predicated region fallthrough
CT: control target
= control target key end

     0   :  { %7 = vsyncpa [#allocation3], 0  ;;  %s383_s0 = inlined_call_operand.hbm [shape: f32[16,256], index: 0, kind: input, shape index: {}]   ;;  %s384_s1 = inlined_call_operand.hbm [shape: bf16[256,128], index: 1, kind: input, shape index: {}]   ;;  %s385_s2 = inlined_call_operand.vmem [shape: f32[1,16,128], index: 2, kind: output, shape index: {}]  }
   0x1   :  { %8 = vsyncpa [#allocation5], 0  ;;  %s350_s9 = smov [#allocation2]  }
   0x2   :  { %s18_s10 = sshll.u32 %s350_s9, 4  ;;  %s19_s10 = int_to_ptr.vmem [resolvable:$true] %s18_s10 }
   0x3   :  { %s314_s11 = scalar_lea.vmem %s19_s10, 512  ;;  %p319_p1 = scmp.lt.s32.totalorder %s19_s10, %s19_s10 }
   0x4   :  { %p315_p0 = scmp.ne.s32.totalorder %s19_s10, %s314_s11  ;;  %p320_p2 = scmp.lt.s32.totalorder %s314_s11, %s314_s11 }
   0x6   :  { %p321_p3 = por %p320_p2, %p319_p1 }
   0x8   :  { %p322_p4 = pnand %p321_p3, %p315_p0 }
   0xa   :  { %325 = shalt.err (!%p322_p4)
}
   0xb   :  { %s351_s12 = smov 256   ;;  %s352_s13 = smov 16  }
   0xc   :  { %24 = dma.hbm_to_vmem [thread:$0]  %s383_s0, 512, %s19_s10, [#allocation3], %s351_s12, %s351_s12, %s352_s13  }
   0xd   :  { %s353_s16 = smov [#allocation4]  }
   0xe   :  { %s34_s17 = sshll.u32 %s353_s16, 4  ;;  %s35_s17 = int_to_ptr.vmem [resolvable:$true] %s34_s17 }
   0xf   :  { %s334_s18 = scalar_lea.vmem %s35_s17, 2048  ;;  %p339_p6 = scmp.lt.s32.totalorder %s35_s17, %s35_s17 }
  0x10   :  { %p335_p5 = scmp.ne.s32.totalorder %s35_s17, %s334_s18  ;;  %p340_p7 = scmp.lt.s32.totalorder %s334_s18, %s334_s18 }
  0x12   :  { %p341_p8 = por %p340_p7, %p339_p6 }
  0x14   :  { %p342_p9 = pnand %p341_p8, %p335_p5 }
  0x16   :  { %345 = shalt.err (!%p342_p9)
}
  0x17   :  { %s354_s19 = smov 64   ;;  %s355_s20 = smov 4  }
  0x18   :  { %40 = dma.hbm_to_vmem [thread:$0]  %s384_s1, 2048, %s35_s17, [#allocation5], %s354_s19, %s354_s19, %s355_s20  }
  0x19   :  { %346 = dma.done.wait [#allocation3], 512  }
  0x1a   :  { %347 = vsyncadd [#allocation3], 4294966784 }
  0x1b   :  { %348 = dma.done.wait [#allocation5], 2048  }
  0x1c   :  { %349 = vsyncadd [#allocation5], 4294965248  ;;  %v290_v0 = vld [vmem:[#allocation4 + $0x78] sm:$0xff]   ;;  %v292_v2 = vld [vmem:[#allocation4 + $0x70] sm:$0xff]  }
  0x1d   :  { %v291_v1 = vld [vmem:[#allocation4 + $0x38] sm:$0xff]   ;;  %261 = vmatprep.subr.bf16.mxu0 %v290_v0  ;;  %v293_v3 = vld [vmem:[#allocation4 + $0x30] sm:$0xff]   ;;  %v294_v4 = vld [vmem:[#allocation4 + $0x68] sm:$0xff]  }
  0x1e   :  { %262 = vmatpush3.bf16.msra.mxu0 %v291_v1  ;;  %v295_v5 = vld [vmem:[#allocation4 + $0x28] sm:$0xff]   ;;  %v296_v6 = vld [vmem:[#allocation4 + $0x60] sm:$0xff]   ;;  %v298_v8 = vld [vmem:[#allocation4 + $0x58] sm:$0xff]  }
  0x1f   :  { %263 = vmatprep.subr.bf16.mxu0 %v292_v2  ;;  %v297_v7 = vld [vmem:[#allocation4 + $0x20] sm:$0xff]   ;;  %v299_v9 = vld [vmem:[#allocation4 + $0x18] sm:$0xff]   ;;  %v300_v10 = vld [vmem:[#allocation4 + $0x50] sm:$0xff]  }
  0x20   :  { %v61_v11 = vld [vmem:[#allocation2 + $0x8] sm:$0xff]  ;;  %v63_v12 = vld [vmem:[#allocation2 + $0x18] sm:$0xff]  ;;  %v301_v14 = vld [vmem:[#allocation4 + $0x10] sm:$0xff]  }
  0x21   :  { %v65_v13 = vpack.c.bf16 %v63_v12, %v61_v11  ;;  %v302_v15 = vld [vmem:[#allocation4 + $0x48] sm:$0xff]   ;;  %v304_v17 = vld [vmem:[#allocation4 + $0x40] sm:$0xff]   ;;  %v62_v20 = vld [vmem:[#allocation2 + $0x10] sm:$0xff] }
  0x22   :  { %264 = vmatpush3.bf16.msra.mxu0 %v293_v3  ;;  %v303_v16 = vld [vmem:[#allocation4 + $0x8] sm:$0xff]   ;;  %v305_v18 = vld [vmem:[#allocation4] sm:$0xff]  }
  0x23   :  { %265 = vmatprep.subr.bf16.mxu0 %v294_v4  ;;  %226 = vmatprep.mubr.bf16.mxu0 %v65_v13  ;;  %v60_v19 = vld [vmem:[#allocation2] sm:$0xff] }
  0x24   :  { %v64_v21 = vpack.c.bf16 %v62_v20, %v60_v19 }
  0x26   :  { %266 = vmatpush3.bf16.msra.mxu0 %v295_v5 }
  0x27   :  { %267 = vmatprep.subr.bf16.mxu0 %v296_v6 }
  0x2a   :  { %268 = vmatpush3.bf16.msra.mxu0 %v297_v7 }
  0x2b   :  { %269 = vmatprep.subr.bf16.mxu0 %v298_v8 }
  0x2e   :  { %270 = vmatpush3.bf16.msra.mxu0 %v299_v9 }
  0x2f   :  { %271 = vmatprep.subr.bf16.mxu0 %v300_v10 }
  0x32   :  { %272 = vmatpush3.bf16.msra.mxu0 %v301_v14 }
  0x33   :  { %273 = vmatprep.subr.bf16.mxu0 %v302_v15 }
  0x36   :  { %274 = vmatpush3.bf16.msra.mxu0 %v303_v16 }
  0x37   :  { %275 = vmatprep.subr.bf16.mxu0 %v304_v17 }
  0x3a   :  { %276 = vmatpush3.bf16.msra.mxu0 %v305_v18 }
  0x3d   :  { %227 = vmatmul.mubr.bf16.vlgmr.msra.gmra.mxu0 %v64_v21 }
  0xfd   :  { %v277_v22 = vpop.f32.mrf.mxu0 }
  0xff   :  { %v278_v23 = vpop.f32.mrf.mxu0 }
 0x100   :  { %v279_v24 = vadd.f32 %v278_v23, %v277_v22 }
 0x101   :  { %v280_v25 = vpop.f32.mrf.mxu0 }
 0x102   :  { %237 = vst [vmem:[%s385_s2] sm:$0xff] %v279_v24 }
 0x103   :  { %v281_v26 = vpop.f32.mrf.mxu0 }
 0x104   :  { %v282_v27 = vadd.f32 %v281_v26, %v280_v25 }
 0x106   :  { %238 = vst [vmem:[%s385_s2 + $0x8] sm:$0xff] %v282_v27 }
 0x107   :  { %243 = vsyncpa [#allocation3], 1 }
 0x108   :  { %244 = vsyncpa [#allocation5], 1 }

// kernel: _clap_losses.3
= control target key start
LH: loop header
LB: loop body
LE: loop exit
PB: predicated region body
PF: predicated region fallthrough
CT: control target
= control target key end

     0   :  { %9 = vsyncpa [#allocation3], 0  ;;  %vm21_vm0 = vcmask 1043456   ;;  %s333_s0 = inlined_call_operand.vmem [shape: f32[1,4,4,128], index: 0, kind: input, shape index: {}]   ;;  %s334_s1 = inlined_call_operand.hbm [shape: f32[1,1], index: 1, kind: output, shape index: {0}]   ;;  %s335_s2 = inlined_call_operand.hbm [shape: f32[1,1], index: 2, kind: output, shape index: {1}]   ;;  %s336_s3 = inlined_call_operand.hbm [shape: f32[1,1], index: 3, kind: output, shape index: {2}]  }
   0x1   :  { %v13_v0 = vld [vmem:[%s333_s0] sm:$0xf]  ;;  %v14_v1 = vld [vmem:[%s333_s0 + $0x4] sm:$0xf]  ;;  %v15_v2 = vld [vmem:[%s333_s0 + $0x8] sm:$0xf] }
   0x2   :  { %v16_v3 = vld [vmem:[%s333_s0 + $0xc] sm:$0xf]  ;;  %v22_v4 = vsel %vm21_vm0, %v13_v0, 0.0  ;;  %v29_v5 = vsel %vm21_vm0, %v14_v1, 0.0  ;;  %v36_v6 = vsel %vm21_vm0, %v15_v2, 0.0 }
   0x3   :  { %v43_v7 = vsel %vm21_vm0, %v16_v3, 0.0 }
   0x4   :  { %10 = vsyncpa [#allocation5], 0  ;;  %v23_v8 = vrot.slane %v22_v4, 4  ;;  %v30_v9 = vrot.slane %v29_v5, 4  ;;  %v37_v10 = vrot.slane %v36_v6, 4  ;;  %v44_v11 = vrot.slane %v43_v7, 4 }
   0x5   :  { %vm58_vm1 = vcmask 1041409   ;;  %vm60_vm2 = vcmask 1042434   ;;  %vm62_vm3 = vcmask 1043459   ;;  %vm89_vm4 = vcmask 1041408   ;;  %s269_s20 = smov [#allocation2]   ;;  %s270_s22 = smov [#allocation4]  }
   0x6   :  { %v24_v12 = vadd.f32 %v23_v8, %v22_v4  ;;  %v31_v13 = vadd.f32 %v30_v9, %v29_v5  ;;  %v38_v14 = vadd.f32 %v37_v10, %v36_v6  ;;  %v45_v15 = vadd.f32 %v44_v11, %v43_v7  ;;  %s159_s21 = sshll.u32 %s269_s20, 4  ;;  %s169_s23 = sshll.u32 %s270_s22, 4  ;;  %s160_s21 = int_to_ptr.vmem [resolvable:$true] %s159_s21  ;;  %s170_s23 = int_to_ptr.vmem [resolvable:$true] %s169_s23 }
   0x7   :  { %vm93_vm5 = vcmask 1024   ;;  %vm108_vm6 = vcmask 0   ;;  %s271_s24 = smov [#allocation6]   ;;  %s205_s28 = scalar_lea.vmem %s160_s21, 16 }
   0x8   :  { %v25_v16 = vrot.slane %v24_v12, 2  ;;  %v32_v17 = vrot.slane %v31_v13, 2  ;;  %v39_v18 = vrot.slane %v38_v14, 2  ;;  %v46_v19 = vrot.slane %v45_v15, 2  ;;  %s179_s25 = sshll.u32 %s271_s24, 4  ;;  %p206_p0 = scmp.ne.s32.totalorder %s160_s21, %s205_s28  ;;  %s314_s25 = int_to_ptr.vmem [resolvable:$true] %s179_s25 }
   0x9   :  { %s209_s29 = scalar_lea.vmem %s160_s21, 32  ;;  %p210_p1 = scmp.lt.s32.totalorder %s160_s21, %s160_s21 }
   0xa   :  { %v26_v20 = vadd.f32 %v25_v16, %v24_v12  ;;  %v33_v21 = vadd.f32 %v32_v17, %v31_v13  ;;  %v40_v22 = vadd.f32 %v39_v18, %v38_v14  ;;  %v47_v23 = vadd.f32 %v46_v19, %v45_v15  ;;  %p211_p2 = scmp.lt.s32.totalorder %s209_s29, %s205_s28 }
   0xc   :  { %v27_v24 = vrot.slane %v26_v20, 1  ;;  %v34_v25 = vrot.slane %v33_v21, 1  ;;  %v41_v26 = vrot.slane %v40_v22, 1  ;;  %v48_v27 = vrot.slane %v47_v23, 1  ;;  %p212_p3 = por %p211_p2, %p210_p1 }
   0xe   :  { %v28_v28 = vadd.f32 %v27_v24, %v26_v20  ;;  %v35_v29 = vadd.f32 %v34_v25, %v33_v21  ;;  %v42_v30 = vadd.f32 %v41_v26, %v40_v22  ;;  %v49_v31 = vadd.f32 %v48_v27, %v47_v23  ;;  %p213_p4 = pnand %p212_p3, %p206_p0 }
  0x10   :  { %v50_v32 = vmul.f32 %v28_v28, %v28_v28  ;;  %v51_v33 = vmul.f32 %v35_v29, %v35_v29  ;;  %v52_v34 = vmul.f32 %v42_v30, %v42_v30  ;;  %v53_v35 = vmul.f32 %v49_v31, %v49_v31 }
  0x12   :  { %v59_v36 = vsel %vm58_vm1, %v51_v33, %v50_v32 }
  0x13   :  { %v61_v37 = vsel %vm60_vm2, %v52_v34, %v59_v36 }
  0x14   :  { %v63_v38 = vsel %vm62_vm3, %v53_v35, %v61_v37 }
  0x15   :  { %v65_v39 = vsel %vm21_vm0, %v63_v38, 0.0 }
  0x16   :  { %66 = vadd.xlane.f32.xlu0 %v65_v39 }
  0x9f   :  { %v67_v40 = vpop.xlane.xlu0 %66 }
  0xa0   :  { %v68_v41 = vmax.f32 %v67_v40, 1e-24 }
  0xa2   :  { %203 = vrsqrt.f32 %v68_v41 }
  0xaf   :  { %v204_v42 = vpop.eup %203 }
  0xb0   :  { %v71_v43 = vrot.slane %v204_v42, 1  ;;  %v72_v44 = vrot.slane %v204_v42, 2  ;;  %v73_v45 = vrot.slane %v204_v42, 3  ;;  %v78_v46 = vmul.f32 %v204_v42, %v28_v28 }
  0xb2   :  { %v79_v47 = vmul.f32 %v71_v43, %v35_v29  ;;  %v80_v48 = vmul.f32 %v72_v44, %v42_v30  ;;  %v81_v49 = vmul.f32 %v73_v45, %v49_v31 }
  0xb4   :  { %v83_v50 = vmul.f32 %v81_v49, %v79_v47  ;;  %v110_v51 = vsub.f32 %v78_v46, %v80_v48  ;;  %v111_v52 = vsub.f32 %v79_v47, %v81_v49  ;;  %v82_v53 = vmul.f32 %v80_v48, %v78_v46 }
  0xb6   :  { %v86_v54 = vrot.slane %v83_v50, 7  ;;  %v134_v55 = vand.u32 2147483647, %v111_v52  ;;  %v113_v56 = vmul.f32 %v111_v52, %v111_v52  ;;  %v133_v58 = vand.u32 2147483647, %v110_v51 }
  0xb7   :  { %v112_v61 = vmul.f32 %v110_v51, %v110_v51 }
  0xb8   :  { %v87_v57 = vsel %vm58_vm1, %v86_v54, %v82_v53  ;;  %v137_v59 = vrot.slane %v134_v55, 7  ;;  %v116_v62 = vrot.slane %v113_v56, 7 }
  0xb9   :  { %v90_v60 = vsel %vm89_vm4, %v87_v57, 0.0 }
  0xba   :  { %91 = vadd.xlane.f32.xlu0 %v90_v60  ;;  %v138_v63 = vsel %vm58_vm1, %v137_v59, %v133_v58  ;;  %v117_v0 = vsel %vm58_vm1, %v116_v62, %v112_v61 }
  0xbb   :  { %v119_v1 = vsel %vm89_vm4, %v117_v0, 0.0  ;;  %v140_v2 = vsel %vm89_vm4, %v138_v63, 0.0 }
  0xbe   :  { %141 = vadd.xlane.f32.xlu0 %v140_v2 }
 0x143   :  { %v92_v3 = vpop.xlane.xlu0 %91 }
 0x144   :  { %v94_v4 = vsel %vm93_vm5, %v92_v3, 0.0 }
 0x145   :  { %95 = vadd.xlane.f32.xlu1 %v94_v4 }
 0x147   :  { %v142_v5 = vpop.xlane.xlu0 %141 }
 0x148   :  { %v143_v6 = vrot.slane %v142_v5, 4 }
 0x149   :  { %120 = vadd.xlane.f32.xlu1 %v119_v1 }
 0x14a   :  { %v144_v7 = vadd.f32 %v143_v6, %v142_v5 }
 0x14c   :  { %v145_v11 = vrot.slane %v144_v7, 2 }
 0x14e   :  { %v146_v17 = vadd.f32 %v145_v11, %v144_v7 }
 0x150   :  { %v147_v22 = vrot.slane %v146_v17, 1 }
 0x152   :  { %v148_v25 = vadd.f32 %v147_v22, %v146_v17 }
 0x1ce   :  { %v96_v8 = vpop.xlane.xlu1 %95 }
 0x1cf   :  { %v97_v9 = vrot.slane %v96_v8, 4 }
 0x1d1   :  { %v98_v10 = vadd.f32 %v97_v9, %v96_v8 }
 0x1d2   :  { %v121_v12 = vpop.xlane.xlu1 %120 }
 0x1d3   :  { %v99_v13 = vrot.slane %v98_v10, 2  ;;  %v122_v14 = vrot.slane %v121_v12, 4 }
 0x1d5   :  { %v123_v15 = vadd.f32 %v122_v14, %v121_v12  ;;  %v100_v16 = vadd.f32 %v99_v13, %v98_v10 }
 0x1d7   :  { %v124_v18 = vrot.slane %v123_v15, 2  ;;  %v101_v19 = vrot.slane %v100_v16, 1 }
 0x1d9   :  { %v125_v20 = vadd.f32 %v124_v18, %v123_v15  ;;  %v102_v21 = vadd.f32 %v101_v19, %v100_v16 }
 0x1db   :  { %194 = vpush %v102_v21  ;;  %v126_v23 = vrot.slane %v125_v20, 1 }
 0x1dd   :  { %v127_v24 = vadd.f32 %v126_v23, %v125_v20 }
 0x1df   :  { %196 = vpush %v127_v24 }
 0x1e0   :  { %198 = vpush %v148_v25 }
 0x20c   :  { %s195_s0 = spop %194 }
 0x20d   :  { %v104_v26 = vstv %s195_s0 }
 0x20e   :  { %v106_v27 = vmul.f32 0.5, %v104_v26 }
 0x210   :  { %v107_v28 = vsub.f32 1.0, %v106_v27  ;;  %s197_s26 = spop %196 }
 0x211   :  { %v129_v29 = vstv %s197_s26  ;;  %s199_s27 = spop %198 }
 0x212   :  { %v131_v30 = vmul.f32 0.00390625, %v129_v29  ;;  %v150_v31 = vstv %s199_s27  ;;  %109 = vst.msk [vmem:[#allocation2] sm:$0x1] %vm108_vm6, %v107_v28 }
 0x213   :  { %v151_v32 = vmul.f32 0.00390625, %v150_v31 }
 0x214   :  { %216 = shalt.err (!%p213_p4)
}
 0x215   :  { %162 = dma.vmem_to_hbm [thread:$0]  %s160_s21, 16, %s334_s1, [#allocation3]   ;;  %132 = vst.msk [vmem:[#allocation4] sm:$0x1] %vm108_vm6, %v131_v30 }
 0x216   :  { %s225_s5 = scalar_lea.vmem %s170_s23, 16  ;;  %s229_s6 = scalar_lea.vmem %s170_s23, 32 }
 0x217   :  { %p226_p5 = scmp.ne.s32.totalorder %s170_s23, %s225_s5  ;;  %p230_p6 = scmp.lt.s32.totalorder %s170_s23, %s170_s23 }
 0x218   :  { %p231_p7 = scmp.lt.s32.totalorder %s229_s6, %s225_s5 }
 0x21a   :  { %p232_p8 = por %p231_p7, %p230_p6 }
 0x21c   :  { %p233_p9 = pnand %p232_p8, %p226_p5 }
 0x21e   :  { %236 = shalt.err (!%p233_p9)
}
 0x21f   :  { %172 = dma.vmem_to_hbm [thread:$0]  %s170_s23, 16, %s335_s2, [#allocation5]   ;;  %152 = vst.msk [vmem:[#allocation6] sm:$0x1] %vm108_vm6, %v151_v32 }
 0x220   :  { %s245_s1 = scalar_lea.vmem %s314_s25, 16  ;;  %s249_s9 = scalar_lea.vmem %s314_s25, 32 }
 0x221   :  { %p246_p10 = scmp.ne.s32.totalorder %s314_s25, %s245_s1  ;;  %p250_p11 = scmp.lt.s32.totalorder %s314_s25, %s314_s25 }
 0x222   :  { %p251_p12 = scmp.lt.s32.totalorder %s249_s9, %s245_s1 }
 0x224   :  { %p252_p13 = por %p251_p12, %p250_p11 }
 0x226   :  { %p253_p0 = pnand %p252_p13, %p246_p10 }
 0x228   :  { %256 = shalt.err (!%p253_p0)
}
 0x229   :  { %182 = dma.vmem_to_hbm [thread:$0]  %s314_s25, 16, %s336_s3, [#allocation5]  }
 0x22a   :  { %265 = dma.done.wait [#allocation3], 16  }
 0x22b   :  { %266 = vsyncadd [#allocation3], 4294967280 }
 0x22c   :  { %267 = dma.done.wait [#allocation5], 32  }
 0x22d   :  { %268 = vsyncadd [#allocation5], 4294967264 }
 0x22e   :  { %192 = vsyncpa [#allocation3], 1 }
 0x22f   :  { %193 = vsyncpa [#allocation5], 1 }

</bundles_post_ra>
